<compile_context>
chip_gen: v5e
topology: v5e:2x2
jax: 0.10.0
libtpu: 0.0.40
codegen_flags: <defaults>
</compile_context>

<pallas_src>
import jax
import jax.numpy as jnp
from jax import lax
from jax.experimental import pallas as pl
from jax.experimental.pallas import tpu as pltpu

NEG_INF = -1e9  # padding logit for heterogeneous output_dims


# ---------------------------------------------------------------------------
# Kernel
# ---------------------------------------------------------------------------
def _make_kernel(num_deciders, omax):
    def kernel(x_ref, w1_ref, b1_ref, w2_ref, b2_ref, act_ref, stats_ref):
        # x_ref: (TB, In); shared leading ReLU (same for every decider) hoisted.
        x = jnp.maximum(x_ref[...], 0.0)
        tb = x.shape[0]

        args = []
        logp = jnp.zeros((tb, 1), jnp.float32)
        ent = jnp.zeros((tb, 1), jnp.float32)

        for d in range(num_deciders):  # static, small unrolled loop
            h = jnp.dot(x, w1_ref[d], preferred_element_type=jnp.float32) + b1_ref[d]
            h = jnp.maximum(h, 0.0)                                            # (TB, H)
            z = jnp.dot(h, w2_ref[d], preferred_element_type=jnp.float32) + b2_ref[d]  # (TB, Omax)

            m = jnp.max(z, axis=-1, keepdims=True)
            zz = z - m
            e = jnp.exp(zz)
            s = jnp.sum(e, axis=-1, keepdims=True)
            lse = jnp.log(s)                       # shifted log-sum-exp

            # log_prob of the argmax action:  z[argmax] - (m + lse) = -lse
            logp = logp - lse
            # entropy = lse - sum(softmax(zz) * zz); reciprocal on the EUP slot.
            p = e * pl.reciprocal(s, approx=True)
            ent = ent + (lse - jnp.sum(p * zz, axis=-1, keepdims=True))

            # first-occurrence argmax via iota + min (no argmax lowering needed)
            idx = lax.broadcasted_iota(jnp.int32, z.shape, 1)
            arg = jnp.min(jnp.where(z == m, idx, jnp.int32(omax)),
                          axis=-1, keepdims=True)
            args.append(arg)

        act_ref[...] = jnp.concatenate(args, axis=-1)            # (TB, Nd) int32
        stats_ref[...] = jnp.concatenate([logp, ent], axis=-1)   # (TB, 2): [log_prob, entropy]

    return kernel


# ---------------------------------------------------------------------------
# Wrapper
# ---------------------------------------------------------------------------
def discrete_actions(logits, packed, *, block_b=32):
    """Eval-mode DiscreteActions.forward: returns (action, action_log, entropy)."""
    B, In = logits.shape
    w1, b1, w2, b2 = packed["w1"], packed["b1"], packed["w2"], packed["b2"]
    Nd, _, H = w1.shape
    Omax = w2.shape[-1]

    TB = min(block_b, B)
    assert B % TB == 0, "batch must be a multiple of the batch tile"
    grid = (B // TB,)

    def const(shape):
        return pl.BlockSpec(shape, lambda i, n=len(shape): (0,) * n)

    flops = 2 * B * Nd * (In * H + H * Omax)
    transcendentals = B * Nd * (Omax + 2)                 # exp per logit + log + recip
    bytes_accessed = 4 * (logits.size + w1.size + b1.size + w2.size + b2.size
                          + B * Nd + B * 2)

    act, stats = pl.pallas_call(
        _make_kernel(Nd, Omax),
        out_shape=(jax.ShapeDtypeStruct((B, Nd), jnp.int32),
                   jax.ShapeDtypeStruct((B, 2), jnp.float32)),
        grid=grid,
        in_specs=[pl.BlockSpec((TB, In), lambda i: (i, 0)),
                  const(w1.shape), const(b1.shape),
                  const(w2.shape), const(b2.shape)],
        out_specs=(pl.BlockSpec((TB, Nd), lambda i: (i, 0)),
                   pl.BlockSpec((TB, 2), lambda i: (i, 0))),
        compiler_params=pltpu.CompilerParams(
            dimension_semantics=("parallel",),
            vmem_limit_bytes=32 * 1024 * 1024),
        cost_estimate=pl.CostEstimate(flops=flops,
                                      transcendentals=transcendentals,
                                      bytes_accessed=bytes_accessed),
    )(logits, w1, b1, w2, b2)

    return act, stats[:, 0], stats[:, 1]


# ---------------------------------------------------------------------------
# Parameter construction (matches nn.Linear conventions, then packs for TPU)
# ---------------------------------------------------------------------------
def init_decider_params(key, input_dim, hidden_dim, output_dims):
    params = []
    for od in output_dims:
        key, k1, k2, k3, k4 = jax.random.split(key, 5)
        params.append({
            "w1": 0.2 * jax.random.normal(k1, (hidden_dim, input_dim), jnp.float32),
            "b1": 0.1 * jax.random.normal(k2, (hidden_dim,), jnp.float32),
            "w2": 0.2 * jax.random.normal(k3, (od, hidden_dim), jnp.float32),
            "b2": 0.1 * jax.random.normal(k4, (od,), jnp.float32),
        })
    return params


def pack_params(decider_params, output_dims):
    """Stack per-decider weights, transpose to x@W form, pad to max output dim."""
    omax = max(output_dims)
    w1 = jnp.stack([p["w1"].T for p in decider_params])                       # (Nd, In, H)
    b1 = jnp.stack([p["b1"].reshape(1, -1) for p in decider_params])          # (Nd, 1, H)
    w2 = jnp.stack([jnp.pad(p["w2"].T, ((0, 0), (0, omax - od)))
                    for p, od in zip(decider_params, output_dims)])           # (Nd, H, Omax)
    b2 = jnp.stack([jnp.pad(p["b2"], (0, omax - od),
                            constant_values=NEG_INF).reshape(1, -1)
                    for p, od in zip(decider_params, output_dims)])           # (Nd, 1, Omax)
    return {"w1": w1, "b1": b1, "w2": w2, "b2": b2}


# ---------------------------------------------------------------------------
# Pure-JAX reference (eval mode, unpadded per-decider weights)
# ---------------------------------------------------------------------------
def reference(logits, decider_params):
    acts, logps, ents = [], [], []
    for p in decider_params:
        h = jax.nn.relu(logits)
        h = jax.nn.relu(h @ p["w1"].T + p["b1"])
        z = h @ p["w2"].T + p["b2"]
        lz = jax.nn.log_softmax(z, axis=-1)
        a = jnp.argmax(z, axis=-1)
        lp = jnp.take_along_axis(lz, a[:, None], axis=-1)[:, 0]
        en = -jnp.sum(jnp.exp(lz) * lz, axis=-1)
        acts.append(a); logps.append(lp); ents.append(en)
    action = jnp.stack(acts, axis=-1)                        # (B, Nd)
    action_log = jnp.sum(jnp.stack(logps, axis=-1), axis=-1)  # (B,)
    entropy = jnp.sum(jnp.stack(ents, axis=-1), axis=-1)      # (B,)
    return action, action_log, entropy


# ---------------------------------------------------------------------------
if __name__ == "__main__":
    key = jax.random.PRNGKey(0)
    B, In = 64, 32
    H = In                        # hidden_dim defaults to input_dim
    output_dims = [5, 3, 4]       # heterogeneous discrete action spaces

    klog, kpar = jax.random.split(key)
    logits = jax.random.normal(klog, (B, In), dtype=jnp.float32)
    dec_params = init_decider_params(kpar, In, H, output_dims)
    packed = pack_params(dec_params, output_dims)

    action, action_log, entropy = discrete_actions(logits, packed, block_b=32)
    action, action_log, entropy = jax.block_until_ready((action, action_log, entropy))

    ref_a, ref_lp, ref_en = reference(logits, dec_params)
    assert action.shape == (B, len(output_dims))
    assert jnp.array_equal(action, ref_a.astype(jnp.int32)), "argmax action mismatch"
    assert jnp.allclose(action_log, ref_lp, atol=1e-4, rtol=1e-4), (
        f"log_prob max_err={float(jnp.max(jnp.abs(action_log - ref_lp)))}")
    # entropy uses EUP approximate reciprocal -> slightly relaxed tolerance
    assert jnp.allclose(entropy, ref_en, atol=5e-3, rtol=5e-3), (
        f"entropy max_err={float(jnp.max(jnp.abs(entropy - ref_en)))}")
    print("KERNEL_OK")
</pallas_src>

<mosaic_0001>
module attributes {stable_mosaic.version = 11 : i64} {
  func.func @kernel(%arg0: i32, %arg1: memref<32x32xf32, #tpu.memory_space<vmem>>, %arg2: memref<3x32x32xf32, #tpu.memory_space<vmem>>, %arg3: memref<3x1x32xf32, #tpu.memory_space<vmem>>, %arg4: memref<3x32x5xf32, #tpu.memory_space<vmem>>, %arg5: memref<3x1x5xf32, #tpu.memory_space<vmem>>, %arg6: memref<32x3xi32, #tpu.memory_space<vmem>>, %arg7: memref<32x2xf32, #tpu.memory_space<vmem>>) attributes {dimension_semantics = [#tpu.dimension_semantics<parallel>], iteration_bounds = array<i64: 2>, scalar_prefetch = 0 : i64, scratch_operands = 0 : i64, tpu.core_type = #tpu.core_type<tc>, window_params = [{transform_indices = @transform_0, window_bounds = array<i64: 32, 32>}, {pipeline_mode = #tpu.pipeline_mode<synchronous>, transform_indices = @transform_1, window_bounds = array<i64: 3, 32, 32>}, {pipeline_mode = #tpu.pipeline_mode<synchronous>, transform_indices = @transform_2, window_bounds = array<i64: 3, 1, 32>}, {pipeline_mode = #tpu.pipeline_mode<synchronous>, transform_indices = @transform_3, window_bounds = array<i64: 3, 32, 5>}, {pipeline_mode = #tpu.pipeline_mode<synchronous>, transform_indices = @transform_4, window_bounds = array<i64: 3, 1, 5>}, {transform_indices = @transform_5, window_bounds = array<i64: 32, 3>}, {transform_indices = @transform_6, window_bounds = array<i64: 32, 2>}]} {
    %c0 = arith.constant 0 : index
    %c0_0 = arith.constant 0 : index
    %0 = vector.load %arg1[%c0, %c0_0] : memref<32x32xf32, #tpu.memory_space<vmem>>, vector<32x32xf32>
    %cst = arith.constant 0.000000e+00 : f32
    %1 = vector.broadcast %cst : f32 to vector<32x32xf32>
    %2 = arith.maximumf %0, %1 : vector<32x32xf32>
    %cst_1 = arith.constant 0.000000e+00 : f32
    %3 = vector.broadcast %cst_1 : f32 to vector<32x1xf32>
    %cst_2 = arith.constant 0.000000e+00 : f32
    %4 = vector.broadcast %cst_2 : f32 to vector<32x1xf32>
    %c0_3 = arith.constant 0 : index
    %c0_4 = arith.constant 0 : index
    %c0_5 = arith.constant 0 : index
    %5 = vector.load %arg2[%c0_3, %c0_4, %c0_5] : memref<3x32x32xf32, #tpu.memory_space<vmem>>, vector<1x32x32xf32>
    %6 = vector.shape_cast %5 : vector<1x32x32xf32> to vector<32x32xf32>
    %cst_6 = arith.constant dense<0.000000e+00> : vector<32x32xf32>
    %7 = tpu.matmul %2, %6, %cst_6 {dimension_numbers = #tpu.dot_dimension_numbers<[1], [0], [0], [1], [0, 0, 1, 1], [], []>} : vector<32x32xf32>, vector<32x32xf32>, vector<32x32xf32> -> vector<32x32xf32>
    %c0_7 = arith.constant 0 : index
    %c0_8 = arith.constant 0 : index
    %c0_9 = arith.constant 0 : index
    %8 = vector.load %arg3[%c0_7, %c0_8, %c0_9] : memref<3x1x32xf32, #tpu.memory_space<vmem>>, vector<1x1x32xf32>
    %9 = vector.shape_cast %8 : vector<1x1x32xf32> to vector<1x32xf32>
    %10 = vector.broadcast %9 : vector<1x32xf32> to vector<32x32xf32>
    %11 = arith.addf %7, %10 : vector<32x32xf32>
    %cst_10 = arith.constant 0.000000e+00 : f32
    %12 = vector.broadcast %cst_10 : f32 to vector<32x32xf32>
    %13 = arith.maximumf %11, %12 : vector<32x32xf32>
    %c0_11 = arith.constant 0 : index
    %c0_12 = arith.constant 0 : index
    %c0_13 = arith.constant 0 : index
    %14 = vector.load %arg4[%c0_11, %c0_12, %c0_13] : memref<3x32x5xf32, #tpu.memory_space<vmem>>, vector<1x32x5xf32>
    %15 = vector.shape_cast %14 : vector<1x32x5xf32> to vector<32x5xf32>
    %cst_14 = arith.constant dense<0.000000e+00> : vector<32x5xf32>
    %16 = tpu.matmul %13, %15, %cst_14 {dimension_numbers = #tpu.dot_dimension_numbers<[1], [0], [0], [1], [0, 0, 1, 1], [], []>} : vector<32x32xf32>, vector<32x5xf32>, vector<32x5xf32> -> vector<32x5xf32>
    %c0_15 = arith.constant 0 : index
    %c0_16 = arith.constant 0 : index
    %c0_17 = arith.constant 0 : index
    %17 = vector.load %arg5[%c0_15, %c0_16, %c0_17] : memref<3x1x5xf32, #tpu.memory_space<vmem>>, vector<1x1x5xf32>
    %18 = vector.shape_cast %17 : vector<1x1x5xf32> to vector<1x5xf32>
    %19 = vector.broadcast %18 : vector<1x5xf32> to vector<32x5xf32>
    %20 = arith.addf %16, %19 : vector<32x5xf32>
    %cst_18 = arith.constant dense<0xFF800000> : vector<32xf32>
    %21 = vector.multi_reduction <maximumf>, %20, %cst_18 [1] : vector<32x5xf32> to vector<32xf32>
    %22 = vector.shape_cast %21 : vector<32xf32> to vector<32x1xf32>
    %23 = vector.broadcast %22 : vector<32x1xf32> to vector<32x5xf32>
    %24 = arith.subf %20, %23 : vector<32x5xf32>
    %25 = math.exp %24 : vector<32x5xf32>
    %cst_19 = arith.constant dense<0.000000e+00> : vector<32xf32>
    %26 = vector.multi_reduction <add>, %25, %cst_19 [1] : vector<32x5xf32> to vector<32xf32>
    %27 = vector.shape_cast %26 : vector<32xf32> to vector<32x1xf32>
    %28 = math.log %27 : vector<32x1xf32>
    %29 = arith.subf %3, %28 : vector<32x1xf32>
    %30 = tpu.reciprocal %27 {approx = true} : vector<32x1xf32> -> vector<32x1xf32>
    %31 = vector.broadcast %30 : vector<32x1xf32> to vector<32x5xf32>
    %32 = arith.mulf %25, %31 : vector<32x5xf32>
    %33 = arith.mulf %32, %24 : vector<32x5xf32>
    %cst_20 = arith.constant dense<0.000000e+00> : vector<32xf32>
    %34 = vector.multi_reduction <add>, %33, %cst_20 [1] : vector<32x5xf32> to vector<32xf32>
    %35 = vector.shape_cast %34 : vector<32xf32> to vector<32x1xf32>
    %36 = arith.subf %28, %35 : vector<32x1xf32>
    %37 = arith.addf %4, %36 : vector<32x1xf32>
    %38 = tpu.iota {dimensions = array<i32: 1>} : vector<32x5xi32>
    %39 = vector.broadcast %22 : vector<32x1xf32> to vector<32x5xf32>
    %40 = arith.cmpf oeq, %20, %39 : vector<32x5xf32>
    %c5_i32 = arith.constant 5 : i32
    %41 = vector.broadcast %c5_i32 : i32 to vector<32x5xi32>
    %42 = arith.select %40, %38, %41 : vector<32x5xi1>, vector<32x5xi32>
    %cst_21 = arith.constant dense<2147483647> : vector<32xi32>
    %43 = vector.multi_reduction <minsi>, %42, %cst_21 [1] : vector<32x5xi32> to vector<32xi32>
    %44 = vector.shape_cast %43 : vector<32xi32> to vector<32x1xi32>
    %c1 = arith.constant 1 : index
    %c0_22 = arith.constant 0 : index
    %c0_23 = arith.constant 0 : index
    %45 = vector.load %arg2[%c1, %c0_22, %c0_23] : memref<3x32x32xf32, #tpu.memory_space<vmem>>, vector<1x32x32xf32>
    %46 = vector.shape_cast %45 : vector<1x32x32xf32> to vector<32x32xf32>
    %cst_24 = arith.constant dense<0.000000e+00> : vector<32x32xf32>
    %47 = tpu.matmul %2, %46, %cst_24 {dimension_numbers = #tpu.dot_dimension_numbers<[1], [0], [0], [1], [0, 0, 1, 1], [], []>} : vector<32x32xf32>, vector<32x32xf32>, vector<32x32xf32> -> vector<32x32xf32>
    %c1_25 = arith.constant 1 : index
    %c0_26 = arith.constant 0 : index
    %c0_27 = arith.constant 0 : index
    %48 = vector.load %arg3[%c1_25, %c0_26, %c0_27] : memref<3x1x32xf32, #tpu.memory_space<vmem>>, vector<1x1x32xf32>
    %49 = vector.shape_cast %48 : vector<1x1x32xf32> to vector<1x32xf32>
    %50 = vector.broadcast %49 : vector<1x32xf32> to vector<32x32xf32>
    %51 = arith.addf %47, %50 : vector<32x32xf32>
    %cst_28 = arith.constant 0.000000e+00 : f32
    %52 = vector.broadcast %cst_28 : f32 to vector<32x32xf32>
    %53 = arith.maximumf %51, %52 : vector<32x32xf32>
    %c1_29 = arith.constant 1 : index
    %c0_30 = arith.constant 0 : index
    %c0_31 = arith.constant 0 : index
    %54 = vector.load %arg4[%c1_29, %c0_30, %c0_31] : memref<3x32x5xf32, #tpu.memory_space<vmem>>, vector<1x32x5xf32>
    %55 = vector.shape_cast %54 : vector<1x32x5xf32> to vector<32x5xf32>
    %cst_32 = arith.constant dense<0.000000e+00> : vector<32x5xf32>
    %56 = tpu.matmul %53, %55, %cst_32 {dimension_numbers = #tpu.dot_dimension_numbers<[1], [0], [0], [1], [0, 0, 1, 1], [], []>} : vector<32x32xf32>, vector<32x5xf32>, vector<32x5xf32> -> vector<32x5xf32>
    %c1_33 = arith.constant 1 : index
    %c0_34 = arith.constant 0 : index
    %c0_35 = arith.constant 0 : index
    %57 = vector.load %arg5[%c1_33, %c0_34, %c0_35] : memref<3x1x5xf32, #tpu.memory_space<vmem>>, vector<1x1x5xf32>
    %58 = vector.shape_cast %57 : vector<1x1x5xf32> to vector<1x5xf32>
    %59 = vector.broadcast %58 : vector<1x5xf32> to vector<32x5xf32>
    %60 = arith.addf %56, %59 : vector<32x5xf32>
    %cst_36 = arith.constant dense<0xFF800000> : vector<32xf32>
    %61 = vector.multi_reduction <maximumf>, %60, %cst_36 [1] : vector<32x5xf32> to vector<32xf32>
    %62 = vector.shape_cast %61 : vector<32xf32> to vector<32x1xf32>
    %63 = vector.broadcast %62 : vector<32x1xf32> to vector<32x5xf32>
    %64 = arith.subf %60, %63 : vector<32x5xf32>
    %65 = math.exp %64 : vector<32x5xf32>
    %cst_37 = arith.constant dense<0.000000e+00> : vector<32xf32>
    %66 = vector.multi_reduction <add>, %65, %cst_37 [1] : vector<32x5xf32> to vector<32xf32>
    %67 = vector.shape_cast %66 : vector<32xf32> to vector<32x1xf32>
    %68 = math.log %67 : vector<32x1xf32>
    %69 = arith.subf %29, %68 : vector<32x1xf32>
    %70 = tpu.reciprocal %67 {approx = true} : vector<32x1xf32> -> vector<32x1xf32>
    %71 = vector.broadcast %70 : vector<32x1xf32> to vector<32x5xf32>
    %72 = arith.mulf %65, %71 : vector<32x5xf32>
    %73 = arith.mulf %72, %64 : vector<32x5xf32>
    %cst_38 = arith.constant dense<0.000000e+00> : vector<32xf32>
    %74 = vector.multi_reduction <add>, %73, %cst_38 [1] : vector<32x5xf32> to vector<32xf32>
    %75 = vector.shape_cast %74 : vector<32xf32> to vector<32x1xf32>
    %76 = arith.subf %68, %75 : vector<32x1xf32>
    %77 = arith.addf %37, %76 : vector<32x1xf32>
    %78 = tpu.iota {dimensions = array<i32: 1>} : vector<32x5xi32>
    %79 = vector.broadcast %62 : vector<32x1xf32> to vector<32x5xf32>
    %80 = arith.cmpf oeq, %60, %79 : vector<32x5xf32>
    %c5_i32_39 = arith.constant 5 : i32
    %81 = vector.broadcast %c5_i32_39 : i32 to vector<32x5xi32>
    %82 = arith.select %80, %78, %81 : vector<32x5xi1>, vector<32x5xi32>
    %cst_40 = arith.constant dense<2147483647> : vector<32xi32>
    %83 = vector.multi_reduction <minsi>, %82, %cst_40 [1] : vector<32x5xi32> to vector<32xi32>
    %84 = vector.shape_cast %83 : vector<32xi32> to vector<32x1xi32>
    %c2 = arith.constant 2 : index
    %c0_41 = arith.constant 0 : index
    %c0_42 = arith.constant 0 : index
    %85 = vector.load %arg2[%c2, %c0_41, %c0_42] : memref<3x32x32xf32, #tpu.memory_space<vmem>>, vector<1x32x32xf32>
    %86 = vector.shape_cast %85 : vector<1x32x32xf32> to vector<32x32xf32>
    %cst_43 = arith.constant dense<0.000000e+00> : vector<32x32xf32>
    %87 = tpu.matmul %2, %86, %cst_43 {dimension_numbers = #tpu.dot_dimension_numbers<[1], [0], [0], [1], [0, 0, 1, 1], [], []>} : vector<32x32xf32>, vector<32x32xf32>, vector<32x32xf32> -> vector<32x32xf32>
    %c2_44 = arith.constant 2 : index
    %c0_45 = arith.constant 0 : index
    %c0_46 = arith.constant 0 : index
    %88 = vector.load %arg3[%c2_44, %c0_45, %c0_46] : memref<3x1x32xf32, #tpu.memory_space<vmem>>, vector<1x1x32xf32>
    %89 = vector.shape_cast %88 : vector<1x1x32xf32> to vector<1x32xf32>
    %90 = vector.broadcast %89 : vector<1x32xf32> to vector<32x32xf32>
    %91 = arith.addf %87, %90 : vector<32x32xf32>
    %cst_47 = arith.constant 0.000000e+00 : f32
    %92 = vector.broadcast %cst_47 : f32 to vector<32x32xf32>
    %93 = arith.maximumf %91, %92 : vector<32x32xf32>
    %c2_48 = arith.constant 2 : index
    %c0_49 = arith.constant 0 : index
    %c0_50 = arith.constant 0 : index
    %94 = vector.load %arg4[%c2_48, %c0_49, %c0_50] : memref<3x32x5xf32, #tpu.memory_space<vmem>>, vector<1x32x5xf32>
    %95 = vector.shape_cast %94 : vector<1x32x5xf32> to vector<32x5xf32>
    %cst_51 = arith.constant dense<0.000000e+00> : vector<32x5xf32>
    %96 = tpu.matmul %93, %95, %cst_51 {dimension_numbers = #tpu.dot_dimension_numbers<[1], [0], [0], [1], [0, 0, 1, 1], [], []>} : vector<32x32xf32>, vector<32x5xf32>, vector<32x5xf32> -> vector<32x5xf32>
    %c2_52 = arith.constant 2 : index
    %c0_53 = arith.constant 0 : index
    %c0_54 = arith.constant 0 : index
    %97 = vector.load %arg5[%c2_52, %c0_53, %c0_54] : memref<3x1x5xf32, #tpu.memory_space<vmem>>, vector<1x1x5xf32>
    %98 = vector.shape_cast %97 : vector<1x1x5xf32> to vector<1x5xf32>
    %99 = vector.broadcast %98 : vector<1x5xf32> to vector<32x5xf32>
    %100 = arith.addf %96, %99 : vector<32x5xf32>
    %cst_55 = arith.constant dense<0xFF800000> : vector<32xf32>
    %101 = vector.multi_reduction <maximumf>, %100, %cst_55 [1] : vector<32x5xf32> to vector<32xf32>
    %102 = vector.shape_cast %101 : vector<32xf32> to vector<32x1xf32>
    %103 = vector.broadcast %102 : vector<32x1xf32> to vector<32x5xf32>
    %104 = arith.subf %100, %103 : vector<32x5xf32>
    %105 = math.exp %104 : vector<32x5xf32>
    %cst_56 = arith.constant dense<0.000000e+00> : vector<32xf32>
    %106 = vector.multi_reduction <add>, %105, %cst_56 [1] : vector<32x5xf32> to vector<32xf32>
    %107 = vector.shape_cast %106 : vector<32xf32> to vector<32x1xf32>
    %108 = math.log %107 : vector<32x1xf32>
    %109 = arith.subf %69, %108 : vector<32x1xf32>
    %110 = tpu.reciprocal %107 {approx = true} : vector<32x1xf32> -> vector<32x1xf32>
    %111 = vector.broadcast %110 : vector<32x1xf32> to vector<32x5xf32>
    %112 = arith.mulf %105, %111 : vector<32x5xf32>
    %113 = arith.mulf %112, %104 : vector<32x5xf32>
    %cst_57 = arith.constant dense<0.000000e+00> : vector<32xf32>
    %114 = vector.multi_reduction <add>, %113, %cst_57 [1] : vector<32x5xf32> to vector<32xf32>
    %115 = vector.shape_cast %114 : vector<32xf32> to vector<32x1xf32>
    %116 = arith.subf %108, %115 : vector<32x1xf32>
    %117 = arith.addf %77, %116 : vector<32x1xf32>
    %118 = tpu.iota {dimensions = array<i32: 1>} : vector<32x5xi32>
    %119 = vector.broadcast %102 : vector<32x1xf32> to vector<32x5xf32>
    %120 = arith.cmpf oeq, %100, %119 : vector<32x5xf32>
    %c5_i32_58 = arith.constant 5 : i32
    %121 = vector.broadcast %c5_i32_58 : i32 to vector<32x5xi32>
    %122 = arith.select %120, %118, %121 : vector<32x5xi1>, vector<32x5xi32>
    %cst_59 = arith.constant dense<2147483647> : vector<32xi32>
    %123 = vector.multi_reduction <minsi>, %122, %cst_59 [1] : vector<32x5xi32> to vector<32xi32>
    %124 = vector.shape_cast %123 : vector<32xi32> to vector<32x1xi32>
    %125 = tpu.concatenate %44, %84, %124 in 1 : vector<32x1xi32>, vector<32x1xi32>, vector<32x1xi32> -> vector<32x3xi32>
    %c0_60 = arith.constant 0 : index
    %c0_61 = arith.constant 0 : index
    %126 = vector.load %arg6[%c0_60, %c0_61] : memref<32x3xi32, #tpu.memory_space<vmem>>, vector<32x3xi32>
    tpu.vector_store %arg6[%c0_60, %c0_61], %125 {strides = array<i32>} : memref<32x3xi32, #tpu.memory_space<vmem>>, vector<32x3xi32>,
    %127 = tpu.concatenate %109, %117 in 1 : vector<32x1xf32>, vector<32x1xf32> -> vector<32x2xf32>
    %c0_62 = arith.constant 0 : index
    %c0_63 = arith.constant 0 : index
    %128 = vector.load %arg7[%c0_62, %c0_63] : memref<32x2xf32, #tpu.memory_space<vmem>>, vector<32x2xf32>
    tpu.vector_store %arg7[%c0_62, %c0_63], %127 {strides = array<i32>} : memref<32x2xf32, #tpu.memory_space<vmem>>, vector<32x2xf32>,
    return
  }
  func.func @transform_0(%arg0: i32) -> (i32, i32) {
    %c0_i32 = arith.constant 0 : i32
    %c0_i32_0 = arith.constant 0 : i32
    return %arg0, %c0_i32 : i32, i32
  }
  func.func @transform_1(%arg0: i32) -> (i32, i32, i32) {
    %c0_i32 = arith.constant 0 : i32
    %c0_i32_0 = arith.constant 0 : i32
    %c0_i32_1 = arith.constant 0 : i32
    %c0_i32_2 = arith.constant 0 : i32
    return %c0_i32, %c0_i32_0, %c0_i32_1 : i32, i32, i32
  }
  func.func @transform_2(%arg0: i32) -> (i32, i32, i32) {
    %c0_i32 = arith.constant 0 : i32
    %c0_i32_0 = arith.constant 0 : i32
    %c0_i32_1 = arith.constant 0 : i32
    %c0_i32_2 = arith.constant 0 : i32
    return %c0_i32, %c0_i32_0, %c0_i32_1 : i32, i32, i32
  }
  func.func @transform_3(%arg0: i32) -> (i32, i32, i32) {
    %c0_i32 = arith.constant 0 : i32
    %c0_i32_0 = arith.constant 0 : i32
    %c0_i32_1 = arith.constant 0 : i32
    %c0_i32_2 = arith.constant 0 : i32
    return %c0_i32, %c0_i32_0, %c0_i32_1 : i32, i32, i32
  }
  func.func @transform_4(%arg0: i32) -> (i32, i32, i32) {
    %c0_i32 = arith.constant 0 : i32
    %c0_i32_0 = arith.constant 0 : i32
    %c0_i32_1 = arith.constant 0 : i32
    %c0_i32_2 = arith.constant 0 : i32
    return %c0_i32, %c0_i32_0, %c0_i32_1 : i32, i32, i32
  }
  func.func @transform_5(%arg0: i32) -> (i32, i32) {
    %c0_i32 = arith.constant 0 : i32
    %c0_i32_0 = arith.constant 0 : i32
    return %arg0, %c0_i32 : i32, i32
  }
  func.func @transform_6(%arg0: i32) -> (i32, i32) {
    %c0_i32 = arith.constant 0 : i32
    %c0_i32_0 = arith.constant 0 : i32
    return %arg0, %c0_i32 : i32, i32
  }
}

</mosaic_0001>

<bundles_post_ra>
// kernel: tpu_custom_call.1
= control target key start
LH: loop header
LB: loop body
LE: loop exit
PB: predicated region body
PF: predicated region fallthrough
CT: control target
= control target key end

     0   :  { %s1322_s21 = smov 0   ;;  %s1930_s0 = inlined_call_operand.vmem [shape: f32[64,32], index: 0, kind: input, shape index: {}]   ;;  %s1931_s1 = inlined_call_operand.vmem [shape: f32[3,32,32], index: 1, kind: input, shape index: {}]   ;;  %s1932_s2 = inlined_call_operand.vmem [shape: f32[3,1,32], index: 2, kind: input, shape index: {}]   ;;  %s1933_s3 = inlined_call_operand.vmem [shape: f32[3,32,5], index: 3, kind: input, shape index: {}]   ;;  %s1934_s4 = inlined_call_operand.vmem [shape: f32[3,1,5], index: 4, kind: input, shape index: {}]   ;;  %s1935_s5 = inlined_call_operand.vmem [shape: s32[64,3], index: 5, kind: output, shape index: {0}]   ;;  %s1936_s6 = inlined_call_operand.vmem [shape: f32[64,2], index: 6, kind: output, shape index: {1}]  }
   0x1 LB: > { %s1128_s22 = sadd.s32 4294967295, %s1285_s21   ;;  %p1132_p0 = scmp.ge.s32.totalorder %s1285_s21, 1  ;;  %s1285_s21 = sphi %s1322_s21, %s17_s21  }
   0x2   : > { %p216_p1 = scmp.lt.s32.totalorder %s1285_s21, 3 }
   0x4   : > { %p217_p2 = pnand %p1132_p0, %p216_p1 }
   0x5   : > { %s1133_s27 = sshll.u32 (!%p217_p2), %s1128_s22, 2 }
   0x6   : > { %220 = sbr.rel (%p217_p2) target bundleno = 732 (0x2dc), region = 40  ;;  %p252_p3 = scmp.lt.s32.totalorder (!%p217_p2), %s1133_s27, 7 }
   0xb   : > { %v280_v0 = vld [vmem:[%s1931_s1 + $0x18] sm:$0xff]  ;;  %v279_v1 = vld [vmem:[%s1931_s1 + $0x10] sm:$0xff]  ;;  %v278_v2 = vld [vmem:[%s1931_s1 + $0x8] sm:$0xff]  ;;  %s1938_s27 = smov (!%p252_p3, %s1133_s27), 7  ;;  %vm285_vm0 = vcmask 261120   ;;  %vm380_vm1 = vcmask 39936  }
   0xc   : > { %310 = vmatpush.msra.mxu0 %v280_v0  ;;  %1185 = vmatpush.msra.mxu2 %v280_v0  ;;  %v277_v3 = vld [vmem:[%s1931_s1] sm:$0xff]  ;;  %v1150_v4 = vld [vmem:[%s1931_s1 + $0x38] sm:$0xff]  ;;  %s1345_s10 = sshll.u32 %s1938_s27, 3  ;;  %v1149_v10 = vld [vmem:[%s1931_s1 + $0x30] sm:$0xff] }
   0xd   : > { %v1168_v5 = vld [vmem:[%s1931_s1 + $0x58] sm:$0xff]  ;;  %s255_s15 = scalar_lea.vmem %s1930_s0, %s1345_s10  ;;  %v1167_v11 = vld [vmem:[%s1931_s1 + $0x50] sm:$0xff]  ;;  %v1148_v12 = vld [vmem:[%s1931_s1 + $0x28] sm:$0xff]  ;;  %s1853_s23 = scalar_lea.vmem %s1935_s5, %s1345_s10 }
   0xe   : > { %311 = vmatpush.msra.mxu0 %v279_v1  ;;  %1186 = vmatpush.msra.mxu2 %v279_v1  ;;  %v269_v6 = vld [vmem:[%s255_s15] sm:$0xff]  ;;  %v271_v7 = vld [vmem:[%s255_s15 + $0x10] sm:$0xff]  ;;  %v1166_v13 = vld [vmem:[%s1931_s1 + $0x48] sm:$0xff]  ;;  %s1876_s26 = scalar_lea.vmem %s1936_s6, %s1345_s10 }
   0xf   : > { %v273_v8 = vmax.f32 %v269_v6, 0.0  ;;  %v275_v9 = vmax.f32 %v271_v7, 0.0  ;;  %v270_v14 = vld [vmem:[%s255_s15 + $0x8] sm:$0xff]  ;;  %v272_v15 = vld [vmem:[%s255_s15 + $0x18] sm:$0xff]  ;;  %v1147_v16 = vld [vmem:[%s1931_s1 + $0x20] sm:$0xff] }
  0x10   : > { %312 = vmatpush.msra.mxu0 %v278_v2  ;;  %1187 = vmatpush.msra.mxu2 %v278_v2  ;;  %v1165_v17 = vld [vmem:[%s1931_s1 + $0x40] sm:$0xff]  ;;  %v274_v18 = vmax.f32 %v270_v14, 0.0  ;;  %v276_v19 = vmax.f32 %v272_v15, 0.0  ;;  %v334_v20 = vld [vmem:[%s1933_s3 + $0x18] sm:$0xff]  ;;  %v333_v21 = vld [vmem:[%s1933_s3 + $0x10] sm:$0xff] }
  0x11   : > { %363 = vmatpush.msra.mxu1 %v334_v20  ;;  %1189 = vmatpush.msra.mxu3 %v334_v20  ;;  %v332_v22 = vld [vmem:[%s1933_s3 + $0x8] sm:$0xff]  ;;  %v331_v23 = vld [vmem:[%s1933_s3] sm:$0xff]  ;;  %v1177_v24 = vld [vmem:[%s1933_s3 + $0x58] sm:$0xff] }
  0x12   : > { %313 = vmatpush.msra.mxu0 %v277_v3  ;;  %1188 = vmatpush.msra.mxu2 %v277_v3  ;;  %v1176_v25 = vld [vmem:[%s1933_s3 + $0x50] sm:$0xff]  ;;  %v1159_v26 = vld [vmem:[%s1933_s3 + $0x38] sm:$0xff]  ;;  %v1175_v27 = vld [vmem:[%s1933_s3 + $0x48] sm:$0xff] }
  0x13   : > { %1139 = vmatmul.msk.f32.vlgmr.msra.gmra.mxu0 %vm285_vm0, %v273_v8  ;;  %1141 = vmatmul.msk.f32.vlgmr.msra.gmra.mxu2 %vm285_vm0, %v275_v9  ;;  %v1158_v28 = vld [vmem:[%s1933_s3 + $0x30] sm:$0xff]  ;;  %v1174_v29 = vld [vmem:[%s1933_s3 + $0x40] sm:$0xff]  ;;  %v1157_v30 = vld [vmem:[%s1933_s3 + $0x28] sm:$0xff] }
  0x14   : > { %553 = vmatpush.msrb.mxu2 %v1150_v4  ;;  %795 = vmatpush.msrb.mxu0 %v1168_v5  ;;  %v1156_v31 = vld [vmem:[%s1933_s3 + $0x20] sm:$0xff] }
  0x15   : > { %364 = vmatpush.msra.mxu1 %v333_v21  ;;  %1190 = vmatpush.msra.mxu3 %v333_v21  ;;  %v1201_v32 = vld [vmem:[%s1932_s2] ss:$0 sm:$0xff]  ;;  %v1202_v42 = vld [vmem:[%s1932_s2 + $0x2] ss:$0 sm:$0xff]  ;;  %v1203_v49 = vld [vmem:[%s1932_s2 + $0x1] ss:$0 sm:$0xff] }
  0x16   : > { %554 = vmatpush.msrb.mxu2 %v1149_v10  ;;  %796 = vmatpush.msrb.mxu0 %v1167_v11  ;;  %v1204_v7 = vld [vmem:[%s1934_s4] ss:$0 sm:$0xff] }
  0x17   : > { %365 = vmatpush.msra.mxu1 %v332_v22  ;;  %1191 = vmatpush.msra.mxu3 %v332_v22 }
  0x18   : > { %555 = vmatpush.msrb.mxu2 %v1148_v12  ;;  %797 = vmatpush.msrb.mxu0 %v1166_v13 }
  0x19   : > { %366 = vmatpush.msra.mxu1 %v331_v23  ;;  %1192 = vmatpush.msra.mxu3 %v331_v23 }
  0x1a   : > { %556 = vmatpush.msrb.mxu2 %v1147_v16  ;;  %798 = vmatpush.msrb.mxu0 %v1165_v17  ;;  %v1205_v16 = vld [vmem:[%s1934_s4 + $0x2] ss:$0 sm:$0xff] }
  0x1b   : > { %1140 = vmatmul.msk.f32.gmra.mxu0 %vm285_vm0, %v274_v18  ;;  %1142 = vmatmul.msk.f32.gmra.mxu2 %vm285_vm0, %v276_v19 }
  0x1c   : > { %850 = vmatpush.msrb.mxu1 %v1177_v24  ;;  %608 = vmatpush.msrb.mxu3 %v1159_v26  ;;  %v1206_v26 = vld [vmem:[%s1934_s4 + $0x1] ss:$0 sm:$0xff] }
  0x1e   : > { %851 = vmatpush.msrb.mxu1 %v1176_v25  ;;  %609 = vmatpush.msrb.mxu3 %v1158_v28 }
  0x20   : > { %852 = vmatpush.msrb.mxu1 %v1175_v27  ;;  %610 = vmatpush.msrb.mxu3 %v1157_v30 }
  0x22   : > { %853 = vmatpush.msrb.mxu1 %v1174_v29  ;;  %611 = vmatpush.msrb.mxu3 %v1156_v31 }
  0x23   : > { %1152 = vmatmul.msk.f32.vlgmr.msrb.gmra.mxu2 %vm285_vm0, %v273_v8  ;;  %1170 = vmatmul.msk.f32.vlgmr.msrb.gmra.mxu0 %vm285_vm0, %v273_v8 }
  0x2b   : > { %1153 = vmatmul.msk.f32.gmra.mxu2 %vm285_vm0, %v274_v18  ;;  %1171 = vmatmul.msk.f32.gmra.mxu0 %vm285_vm0, %v274_v18 }
  0x33   : > { %1154 = vmatmul.msk.f32.gmra.mxu2 %vm285_vm0, %v275_v9  ;;  %1172 = vmatmul.msk.f32.gmra.mxu0 %vm285_vm0, %v275_v9 }
  0x3b   : > { %1155 = vmatmul.msk.f32.gmra.mxu2 %vm285_vm0, %v276_v19  ;;  %1173 = vmatmul.msk.f32.gmra.mxu0 %vm285_vm0, %v276_v19 }
  0x90   : > { %v315_v33 = vpop.f32.mrf.mxu0 }
  0x91   : > { %v316_v34 = vadd.f32 %v1201_v32, %v315_v33 }
  0x93   : > { %v327_v35 = vmax.f32 %v316_v34, 0.0 }
  0x95   : > { %1143 = vmatmul.msk.f32.vlgmr.msra.gmra.mxu1 %vm285_vm0, %v327_v35 }
  0x96   : > { %v321_v36 = vpop.f32.mrf.mxu2 }
  0x97   : > { %v322_v37 = vadd.f32 %v1201_v32, %v321_v36 }
  0x98   : > { %v318_v38 = vpop.f32.mrf.mxu0 }
  0x99   : > { %v329_v39 = vmax.f32 %v322_v37, 0.0  ;;  %v319_v40 = vadd.f32 %v1201_v32, %v318_v38 }
  0x9b   : > { %v328_v41 = vmax.f32 %v319_v40, 0.0  ;;  %1145 = vmatmul.msk.f32.vlgmr.msra.gmra.mxu3 %vm285_vm0, %v329_v39 }
  0x9d   : > { %1144 = vmatmul.msk.f32.gmra.mxu1 %vm285_vm0, %v328_v41 }
  0x9e   : > { %v324_v43 = vpop.f32.mrf.mxu2 }
  0x9f   : > { %v325_v44 = vadd.f32 %v1201_v32, %v324_v43 }
  0xa0   : > { %v800_v45 = vpop.f32.mrf.mxu0 }
  0xa1   : > { %v330_v46 = vmax.f32 %v325_v44, 0.0  ;;  %v801_v47 = vadd.f32 %v1202_v42, %v800_v45 }
  0xa3   : > { %v812_v48 = vmax.f32 %v801_v47, 0.0  ;;  %1146 = vmatmul.msk.f32.gmra.mxu3 %vm285_vm0, %v330_v46  ;;  %v461_v46 = vlaneseq }
  0xa5   : > { %1179 = vmatmul.msk.f32.vlgmr.msrb.gmra.mxu1 %vm285_vm0, %v812_v48  ;;  %v1492_v47 = vand.u32 127, %v461_v46 }
  0xa6   : > { %v558_v50 = vpop.f32.mrf.mxu2 }
  0xa7   : > { %v559_v51 = vadd.f32 %v1203_v49, %v558_v50 }
  0xa8   : > { %v803_v52 = vpop.f32.mrf.mxu0 }
  0xa9   : > { %v570_v53 = vmax.f32 %v559_v51, 0.0  ;;  %v804_v54 = vadd.f32 %v1202_v42, %v803_v52 }
  0xab   : > { %v813_v55 = vmax.f32 %v804_v54, 0.0  ;;  %1161 = vmatmul.msk.f32.vlgmr.msrb.gmra.mxu3 %vm285_vm0, %v570_v53 }
  0xad   : > { %1180 = vmatmul.msk.f32.gmra.mxu1 %vm285_vm0, %v813_v55 }
  0xae   : > { %v561_v56 = vpop.f32.mrf.mxu2 }
  0xaf   : > { %v562_v57 = vadd.f32 %v1203_v49, %v561_v56 }
  0xb0   : > { %v806_v58 = vpop.f32.mrf.mxu0 }
  0xb1   : > { %v571_v59 = vmax.f32 %v562_v57, 0.0  ;;  %v807_v60 = vadd.f32 %v1202_v42, %v806_v58 }
  0xb3   : > { %1162 = vmatmul.msk.f32.gmra.mxu3 %vm285_vm0, %v571_v59  ;;  %v814_v61 = vmax.f32 %v807_v60, 0.0 }
  0xb5   : > { %1181 = vmatmul.msk.f32.gmra.mxu1 %vm285_vm0, %v814_v61 }
  0xb6   : > { %v564_v62 = vpop.f32.mrf.mxu2 }
  0xb7   : > { %v565_v63 = vadd.f32 %v1203_v49, %v564_v62 }
  0xb8   : > { %v809_v0 = vpop.f32.mrf.mxu0 }
  0xb9   : > { %v572_v1 = vmax.f32 %v565_v63, 0.0  ;;  %v810_v2 = vadd.f32 %v1202_v42, %v809_v0 }
  0xbb   : > { %1163 = vmatmul.msk.f32.gmra.mxu3 %vm285_vm0, %v572_v1  ;;  %v815_v3 = vmax.f32 %v810_v2, 0.0 }
  0xbd   : > { %1182 = vmatmul.msk.f32.gmra.mxu1 %vm285_vm0, %v815_v3 }
  0xbe   : > { %v567_v4 = vpop.f32.mrf.mxu2 }
  0xbf   : > { %v568_v5 = vadd.f32 %v1203_v49, %v567_v4 }
  0xc1   : > { %v573_v6 = vmax.f32 %v568_v5, 0.0 }
  0xc3   : > { %1164 = vmatmul.msk.f32.gmra.mxu3 %vm285_vm0, %v573_v6 }
 0x112   : > { %v368_v8 = vpop.f32.mrf.mxu1 }
 0x113   : > { %v369_v9 = vadd.f32 %v1204_v7, %v368_v8 }
 0x115   : > { %v381_v10 = vsel %vm380_vm1, %v369_v9, -inf }
 0x116   : > { %382 = vmax.xlane.f32.xlu0 %v381_v10 }
 0x11a   : > { %v371_v11 = vpop.f32.mrf.mxu1 }
 0x11b   : > { %v372_v12 = vadd.f32 %v1204_v7, %v371_v11 }
 0x11d   : > { %v384_v13 = vsel %vm380_vm1, %v372_v12, -inf }
 0x11e   : > { %v374_v14 = vpop.f32.mrf.mxu3  ;;  %385 = vmax.xlane.f32.xlu0 %v384_v13 }
 0x11f   : > { %v1446_v15 = vadd.f32 %v1204_v7, %v374_v14 }
 0x121   : > { %v387_v17 = vsel %vm380_vm1, %v1446_v15, -inf }
 0x122   : > { %388 = vmax.xlane.f32.xlu1 %v387_v17  ;;  %v855_v18 = vpop.f32.mrf.mxu1 }
 0x123   : > { %v1453_v19 = vadd.f32 %v1205_v16, %v855_v18 }
 0x125   : > { %v867_v20 = vsel %vm380_vm1, %v1453_v19, -inf }
 0x126   : > { %v377_v21 = vpop.f32.mrf.mxu3  ;;  %868 = vmax.xlane.f32.xlu0 %v867_v20 }
 0x127   : > { %v1457_v22 = vadd.f32 %v1204_v7, %v377_v21 }
 0x129   : > { %v390_v23 = vsel %vm380_vm1, %v1457_v22, -inf }
 0x12a   : > { %391 = vmax.xlane.f32.xlu1 %v390_v23  ;;  %v858_v24 = vpop.f32.mrf.mxu1 }
 0x12b   : > { %v1461_v25 = vadd.f32 %v1205_v16, %v858_v24 }
 0x12d   : > { %v870_v27 = vsel %vm380_vm1, %v1461_v25, -inf }
 0x12e   : > { %v613_v28 = vpop.f32.mrf.mxu3  ;;  %871 = vmax.xlane.f32.xlu2 %v870_v27 }
 0x12f   : > { %v1468_v29 = vadd.f32 %v1206_v26, %v613_v28 }
 0x131   : > { %v625_v30 = vsel %vm380_vm1, %v1468_v29, -inf }
 0x132   : > { %626 = vmax.xlane.f32.xlu0 %v625_v30  ;;  %v861_v31 = vpop.f32.mrf.mxu1 }
 0x133   : > { %v1472_v32 = vadd.f32 %v1205_v16, %v861_v31 }
 0x135   : > { %v873_v35 = vsel %vm380_vm1, %v1472_v32, -inf }
 0x136   : > { %v616_v33 = vpop.f32.mrf.mxu3 }
 0x137   : > { %v1474_v34 = vadd.f32 %v1206_v26, %v616_v33 }
 0x139   : > { %v628_v36 = vsel %vm380_vm1, %v1474_v34, -inf }
 0x13a   : > { %629 = vmax.xlane.f32.xlu1 %v628_v36  ;;  %874 = vmax.xlane.f32.xlu0 %v873_v35  ;;  %v864_v37 = vpop.f32.mrf.mxu1 }
 0x13b   : > { %v1480_v38 = vadd.f32 %v1205_v16, %v864_v37 }
 0x13d   : > { %v876_v41 = vsel %vm380_vm1, %v1480_v38, -inf }
 0x13e   : > { %v619_v39 = vpop.f32.mrf.mxu3 }
 0x13f   : > { %v1482_v40 = vadd.f32 %v1206_v26, %v619_v39 }
 0x141   : > { %v631_v42 = vsel %vm380_vm1, %v1482_v40, -inf }
 0x142   : > { %877 = vmax.xlane.f32.xlu1 %v876_v41  ;;  %632 = vmax.xlane.f32.xlu2 %v631_v42 }
 0x146   : > { %v622_v43 = vpop.f32.mrf.mxu3 }
 0x147   : > { %v1488_v44 = vadd.f32 %v1206_v26, %v622_v43 }
 0x149   : > { %v634_v45 = vsel %vm380_vm1, %v1488_v44, -inf }
 0x14a   : > { %635 = vmax.xlane.f32.xlu1 %v634_v45 }
 0x189   : > { %v383_v48 = vpop.xlane.xlu0 %382 }
 0x18a   : > { %v1494_v49 = vsub.f32 %v369_v9, %v383_v48  ;;  %vm463_vm2 = vcmp.eq.f32.partialorder %v369_v9, %v383_v48 }
 0x18b   : > { %v467_v50 = vsel %vm463_vm2, %v1492_v47, 5 }
 0x18c   : > { %v397_v51 = vmul.f32 1.442695, %v1494_v49  ;;  %v1499_v52 = vsel %vm380_vm1, %v467_v50, 2147483647 }
 0x18d   : > { %v473_v53 = vshra.s32 %v1499_v52, 16 }
 0x18e   : > { %1207 = vpow2.f32 %v397_v51 }
 0x18f   : > { %v1502_v54 = vcvt.s32.f32 %v473_v53 }
 0x191   : > { %476 = vmin.xlane.f32.xlu2 %v1502_v54  ;;  %v386_v55 = vpop.xlane.xlu0 %385 }
 0x192   : > { %v1505_v56 = vsub.f32 %v372_v12, %v386_v55  ;;  %vm464_vm3 = vcmp.eq.f32.partialorder %v372_v12, %v386_v55 }
 0x193   : > { %v468_v57 = vsel %vm464_vm3, %v1492_v47, 5 }
 0x194   : > { %v399_v58 = vmul.f32 1.442695, %v1505_v56  ;;  %v1510_v59 = vsel %vm380_vm1, %v468_v57, 2147483647  ;;  %v1512_v60 = vpop.eup %1207 }
 0x195   : > { %v389_v61 = vpop.xlane.xlu1 %388  ;;  %v488_v62 = vshra.s32 %v1510_v59, 16  ;;  %v405_v1 = vsel %vm380_vm1, %v1512_v60, 0.0 }
 0x196   : > { %vm465_vm4 = vcmp.eq.f32.partialorder %v1446_v15, %v389_v61  ;;  %1209 = vpow2.f32 %v399_v58  ;;  %v1531_v6 = vsub.f32 %v1446_v15, %v389_v61 }
 0x197   : > { %v469_v63 = vsel %vm465_vm4, %v1492_v47, 5  ;;  %v1517_v0 = vcvt.s32.f32 %v488_v62 }
 0x198   : > { %v1522_v2 = vsel %vm380_vm1, %v469_v63, 2147483647  ;;  %v401_v14 = vmul.f32 1.442695, %v1531_v6 }
 0x199   : > { %406 = vadd.xlane.f32.xlu2 %v405_v1  ;;  %491 = vmin.xlane.f32.xlu1 %v1517_v0  ;;  %v869_v3 = vpop.xlane.xlu0 %868  ;;  %v503_v4 = vshra.s32 %v1522_v2, 16 }
 0x19a   : > { %v1527_v5 = vsub.f32 %v1453_v19, %v869_v3  ;;  %vm947_vm5 = vcmp.eq.f32.partialorder %v1453_v19, %v869_v3 }
 0x19b   : > { %v951_v7 = vsel %vm947_vm5, %v1492_v47, 5  ;;  %v1534_v8 = vcvt.s32.f32 %v503_v4 }
 0x19c   : > { %v883_v9 = vmul.f32 1.442695, %v1527_v5  ;;  %v1538_v10 = vsel %vm380_vm1, %v951_v7, 2147483647  ;;  %v1540_v11 = vpop.eup %1209 }
 0x19d   : > { %v392_v12 = vpop.xlane.xlu1 %391  ;;  %506 = vmin.xlane.f32.xlu0 %v1534_v8  ;;  %v957_v15 = vshra.s32 %v1538_v10, 16  ;;  %v408_v17 = vsel %vm380_vm1, %v1540_v11, 0.0 }
 0x19e   : > { %v1544_v13 = vsub.f32 %v1457_v22, %v392_v12  ;;  %1211 = vpow2.f32 %v883_v9  ;;  %vm466_vm7 = vcmp.eq.f32.partialorder %v1457_v22, %v392_v12 }
 0x19f   : > { %v1552_v19 = vcvt.s32.f32 %v957_v15  ;;  %v470_v33 = vsel %vm466_vm7, %v1492_v47, 5 }
 0x1a0   : > { %v403_v16 = vmul.f32 1.442695, %v1544_v13  ;;  %v1585_v41 = vsel %vm380_vm1, %v470_v33, 2147483647 }
 0x1a1   : > { %v872_v18 = vpop.xlane.xlu2 %871  ;;  %409 = vadd.xlane.f32.xlu2 %v408_v17  ;;  %v518_v50 = vshra.s32 %v1585_v41, 16 }
 0x1a2   : > { %1213 = vpow2.f32 %v403_v16  ;;  %vm948_vm6 = vcmp.eq.f32.partialorder %v1461_v25, %v872_v18  ;;  %v1564_v27 = vsub.f32 %v1461_v25, %v872_v18 }
 0x1a3   : > { %1215 = vpow2.f32 %v401_v14  ;;  %v952_v21 = vsel %vm948_vm6, %v1492_v47, 5  ;;  %v1606_v57 = vcvt.s32.f32 %v518_v50 }
 0x1a4   : > { %v1554_v20 = vpop.eup %1211  ;;  %v1569_v30 = vsel %vm380_vm1, %v952_v21, 2147483647  ;;  %v885_v36 = vmul.f32 1.442695, %v1564_v27 }
 0x1a5   : > { %960 = vmin.xlane.f32.xlu0 %v1552_v19  ;;  %v627_v23 = vpop.xlane.xlu0 %626  ;;  %v891_v28 = vsel %vm380_vm1, %v1554_v20, 0.0  ;;  %v972_v25 = vshra.s32 %v1569_v30, 16 }
 0x1a6   : > { %vm705_vm8 = vcmp.eq.f32.partialorder %v1468_v29, %v627_v23  ;;  %v1588_v45 = vsub.f32 %v1468_v29, %v627_v23  ;;  %1217 = vpow2.f32 %v885_v36 }
 0x1a7   : > { %v709_v24 = vsel %vm705_vm8, %v1492_v47, 5  ;;  %v1592_v48 = vcvt.s32.f32 %v972_v25 }
 0x1a8   : > { %v1561_v26 = vpop.eup %1213  ;;  %v1577_v35 = vsel %vm380_vm1, %v709_v24, 2147483647  ;;  %v641_v55 = vmul.f32 1.442695, %v1588_v45 }
 0x1a9   : > { %v1571_v31 = vpop.eup %1215  ;;  %892 = vadd.xlane.f32.xlu2 %v891_v28  ;;  %v414_v22 = vsel %vm380_vm1, %v1561_v26, 0.0  ;;  %v715_v39 = vshra.s32 %v1577_v35, 16 }
 0x1aa   : > { %415 = vadd.xlane.f32.xlu1 %v414_v22  ;;  %v411_v37 = vsel %vm380_vm1, %v1571_v31, 0.0  ;;  %1219 = vpow2.f32 %v641_v55 }
 0x1ab   : > { %v1595_v51 = vcvt.s32.f32 %v715_v39 }
 0x1ac   : > { %v1610_v63 = vpop.eup %1217 }
 0x1ad   : > { %v630_v42 = vpop.xlane.xlu1 %629  ;;  %412 = vadd.xlane.f32.xlu0 %v411_v37  ;;  %v875_v43 = vpop.xlane.xlu0 %874  ;;  %v894_v14 = vsel %vm380_vm1, %v1610_v63, 0.0 }
 0x1ae   : > { %vm949_vm9 = vcmp.eq.f32.partialorder %v1472_v32, %v875_v43  ;;  %v1604_v29 = vsub.f32 %v1474_v34, %v630_v42  ;;  %vm706_vm12 = vcmp.eq.f32.partialorder %v1474_v34, %v630_v42  ;;  %v1645_v28 = vsub.f32 %v1472_v32, %v875_v43 }
 0x1af   : > { %v953_v46 = vsel %vm949_vm9, %v1492_v47, 5  ;;  %v710_v24 = vsel %vm706_vm12, %v1492_v47, 5  ;;  %vm1025_vm12 = vcmask 23552  }
 0x1b0   : > { %v1598_v53 = vsel %vm380_vm1, %v953_v46, 2147483647  ;;  %v643_v1 = vmul.f32 1.442695, %v1604_v29  ;;  %v1638_v18 = vpop.eup %1219  ;;  %v1653_v25 = vsel %vm380_vm1, %v710_v24, 2147483647 }
 0x1b1   : > { %975 = vmin.xlane.f32.xlu2 %v1592_v48  ;;  %v987_v58 = vshra.s32 %v1598_v53, 16  ;;  %v649_v33 = vsel %vm380_vm1, %v1638_v18, 0.0  ;;  %v887_v37 = vmul.f32 1.442695, %v1645_v28  ;;  %v730_v39 = vshra.s32 %v1653_v25, 16 }
 0x1b2   : > { %718 = vmin.xlane.f32.xlu1 %v1595_v51  ;;  %1221 = vpow2.f32 %v643_v1 }
 0x1b3   : > { %v1617_v7 = vcvt.s32.f32 %v987_v58  ;;  %v1670_v55 = vcvt.s32.f32 %v730_v39 }
 0x1b5   : > { %v878_v61 = vpop.xlane.xlu1 %877  ;;  %v633_v62 = vpop.xlane.xlu2 %632  ;;  %521 = vmin.xlane.f32.xlu0 %v1606_v57 }
 0x1b6   : > { %vm950_vm10 = vcmp.eq.f32.partialorder %v1480_v38, %v878_v61  ;;  %vm707_vm11 = vcmp.eq.f32.partialorder %v1482_v40, %v633_v62  ;;  %v1620_v9 = vsub.f32 %v1482_v40, %v633_v62  ;;  %v1634_v40 = vsub.f32 %v1480_v38, %v878_v61 }
 0x1b7   : > { %v954_v3 = vsel %vm950_vm10, %v1492_v47, 5  ;;  %v711_v4 = vsel %vm707_vm11, %v1492_v47, 5  ;;  %vm1020_vm11 = vcmask 15360  }
 0x1b8   : > { %v1623_v12 = vsel %vm380_vm1, %v954_v3, 2147483647  ;;  %v1630_v16 = vsel %vm380_vm1, %v711_v4, 2147483647  ;;  %v645_v21 = vmul.f32 1.442695, %v1620_v9  ;;  %v1655_v36 = vpop.eup %1221 }
 0x1b9   : > { %990 = vmin.xlane.f32.xlu2 %v1617_v7  ;;  %v1002_v15 = vshra.s32 %v1623_v12, 16  ;;  %v745_v23 = vshra.s32 %v1630_v16, 16  ;;  %v889_v34 = vmul.f32 1.442695, %v1634_v40  ;;  %v652_v42 = vsel %vm380_vm1, %v1655_v36, 0.0 }
 0x1ba   : > { %895 = vadd.xlane.f32.xlu1 %v894_v14  ;;  %1223 = vpow2.f32 %v645_v21  ;;  %v472_v21 = vand.u32 65535, %v1499_v52 }
 0x1bb   : > { %v1636_v17 = vcvt.s32.f32 %v1002_v15  ;;  %v1650_v22 = vcvt.s32.f32 %v745_v23  ;;  %1225 = vpow2.f32 %v889_v34 }
 0x1bc   : > { %1227 = vpow2.f32 %v887_v37  ;;  %v474_v24 = vcvt.s32.f32 %v472_v21 }
 0x1bd   : > { %1005 = vmin.xlane.f32.xlu0 %v1636_v17  ;;  %v636_v38 = vpop.xlane.xlu1 %635 }
 0x1be   : > { %v1660_v32 = vsub.f32 %v1488_v44, %v636_v38  ;;  %vm708_vm13 = vcmp.eq.f32.partialorder %v1488_v44, %v636_v38  ;;  %v487_v38 = vand.u32 65535, %v1510_v59 }
 0x1bf   : > { %v712_v46 = vsel %vm708_vm13, %v1492_v47, 5 }
 0x1c0   : > { %v1666_v43 = vpop.eup %1223  ;;  %v647_v50 = vmul.f32 1.442695, %v1660_v32  ;;  %v1678_v61 = vsel %vm380_vm1, %v712_v46, 2147483647  ;;  %v489_v39 = vcvt.s32.f32 %v487_v38 }
 0x1c1   : > { %650 = vadd.xlane.f32.xlu2 %v649_v33  ;;  %v1672_v58 = vpop.eup %1225  ;;  %v655_v44 = vsel %vm380_vm1, %v1666_v43, 0.0  ;;  %v760_v62 = vshra.s32 %v1678_v61, 16 }
 0x1c2   : > { %748 = vmin.xlane.f32.xlu1 %v1650_v22  ;;  %1229 = vpow2.f32 %v647_v50  ;;  %v900_v47 = vsel %vm380_vm1, %v1672_v58, 0.0  ;;  %v1683_v1 = vpop.eup %1227 }
 0x1c3   : > { %v897_v3 = vsel %vm380_vm1, %v1683_v1, 0.0  ;;  %v1687_v4 = vcvt.s32.f32 %v760_v62 }
 0x1c5   : > { %653 = vadd.xlane.f32.xlu0 %v652_v42  ;;  %v502_v42 = vand.u32 65535, %v1522_v2 }
 0x1c7   : > { %v504_v50 = vcvt.s32.f32 %v502_v42 }
 0x1c8   : > { %v1689_v14 = vpop.eup %1229 }
 0x1c9   : > { %733 = vmin.xlane.f32.xlu2 %v1670_v55  ;;  %v658_v15 = vsel %vm380_vm1, %v1689_v14, 0.0 }
 0x1ca   : > { %656 = vadd.xlane.f32.xlu1 %v655_v44 }
 0x1cd   : > { %901 = vadd.xlane.f32.xlu0 %v900_v47 }
 0x1d1   : > { %898 = vadd.xlane.f32.xlu2 %v897_v3  ;;  %v956_v3 = vand.u32 65535, %v1538_v10  ;;  %v517_v10 = vand.u32 65535, %v1585_v41 }
 0x1d2   : > { %763 = vmin.xlane.f32.xlu1 %v1687_v4 }
 0x1d5   : > { %659 = vadd.xlane.f32.xlu0 %v658_v15 }
 0x204   : > { %v1695_v23 = vpop.xlane.xlu2 %476 }
 0x205   : > { %vm478_vm14 = vcmp.eq.f32.partialorder %v1502_v54, %v1695_v23 }
 0x206   : > { %v479_v34 = vsel %vm478_vm14, %v474_v24, inf  ;;  %v958_v24 = vcvt.s32.f32 %v956_v3 }
 0x207   : > { %480 = vmin.xlane.f32.xlu0 %v479_v34 }
 0x20c   : > { %v407_v33 = vpop.xlane.xlu2 %406  ;;  %v1700_v37 = vpop.xlane.xlu1 %491 }
 0x20d   : > { %vm493_vm15 = vcmp.eq.f32.partialorder %v1517_v0, %v1700_v37  ;;  %1231 = vrcp.f32 %v407_v33 }
 0x20e   : > { %v494_v52 = vsel %vm493_vm15, %v489_v39, inf }
 0x20f   : > { %495 = vmin.xlane.f32.xlu2 %v494_v52 }
 0x210   : > { %v1705_v46 = vpop.xlane.xlu0 %506 }
 0x211   : > { %vm508_vm0 = vcmp.eq.f32.partialorder %v1534_v8, %v1705_v46 }
 0x212   : > { %v509_v54 = vsel %vm508_vm0, %v504_v50, inf }
 0x213   : > { %510 = vmin.xlane.f32.xlu1 %v509_v54  ;;  %v1232_v59 = vpop.eup %1231 }
 0x214   : > { %v410_v44 = vpop.xlane.xlu2 %409  ;;  %v433_v47 = vmul.f32 %v1232_v59, %v1512_v60  ;;  %v971_v60 = vand.u32 65535, %v1569_v30 }
 0x215   : > { %1233 = vrcp.f32 %v410_v44 }
 0x216   : > { %v437_v2 = vmul.f32 %v433_v47, %v1494_v49  ;;  %v973_v42 = vcvt.s32.f32 %v971_v60 }
 0x218   : > { %v1711_v62 = vpop.xlane.xlu0 %960  ;;  %v441_v0 = vsel %vm380_vm1, %v437_v2, 0.0  ;;  %v714_v2 = vand.u32 65535, %v1577_v35 }
 0x219   : > { %442 = vadd.xlane.f32.xlu2 %v441_v0  ;;  %vm962_vm2 = vcmp.eq.f32.partialorder %v1552_v19, %v1711_v62 }
 0x21a   : > { %v963_v49 = vsel %vm962_vm2, %v958_v24, inf }
 0x21b   : > { %v1234_v8 = vpop.eup %1233 }
 0x21c   : > { %v893_v15 = vpop.xlane.xlu2 %892  ;;  %v434_v38 = vmul.f32 %v1234_v8, %v1540_v11  ;;  %v519_v11 = vcvt.s32.f32 %v517_v10 }
 0x21d   : > { %v1715_v21 = vpop.xlane.xlu1 %415 }
 0x21e   : > { %v438_v19 = vmul.f32 %v434_v38, %v1505_v56 }
 0x220   : > { %v413_v34 = vpop.xlane.xlu0 %412  ;;  %v444_v59 = vsel %vm380_vm1, %v438_v19, 0.0 }
 0x221   : > { %1235 = vrcp.f32 %v413_v34  ;;  %964 = vmin.xlane.f32.xlu2 %v963_v49 }
 0x222   : > { %1237 = vrcp.f32 %v893_v15 }
 0x223   : > { %1239 = vlog2.f32 %v407_v33 }
 0x224   : > { %v1721_v39 = vpop.xlane.xlu2 %975 }
 0x225   : > { %v1724_v52 = vpop.xlane.xlu1 %718  ;;  %vm977_vm3 = vcmp.eq.f32.partialorder %v1592_v48, %v1721_v39 }
 0x226   : > { %v978_v50 = vsel %vm977_vm3, %v973_v42, inf  ;;  %vm720_vm5 = vcmp.eq.f32.partialorder %v1595_v51, %v1724_v52 }
 0x227   : > { %979 = vmin.xlane.f32.xlu0 %v978_v50  ;;  %v1236_v30 = vpop.eup %1235 }
 0x228   : > { %v1729_v54 = vpop.xlane.xlu0 %521  ;;  %v435_v41 = vmul.f32 %v1236_v30, %v1571_v31  ;;  %v1238_v8 = vpop.eup %1237 }
 0x229   : > { %vm523_vm4 = vcmp.eq.f32.partialorder %v1606_v57, %v1729_v54  ;;  %445 = vadd.xlane.f32.xlu2 %v444_v59  ;;  %v716_v57 = vcvt.s32.f32 %v714_v2  ;;  %v919_v24 = vmul.f32 %v1238_v8, %v1554_v20  ;;  %v1240_v35 = vpop.eup %1239 }
 0x22a   : > { %v524_v47 = vsel %vm523_vm4, %v519_v11, inf  ;;  %v439_v48 = vmul.f32 %v435_v41, %v1531_v6  ;;  %v1752_v19 = vmul.f32 0.6931472, %v1240_v35 }
 0x22b   : > { %525 = vmin.xlane.f32.xlu1 %v524_v47  ;;  %v721_v6 = vsel %vm720_vm5, %v716_v57, inf  ;;  %v923_v38 = vmul.f32 %v919_v24, %v1527_v5 }
 0x22c   : > { %v1736_v56 = vpop.xlane.xlu2 %990  ;;  %v447_v3 = vsel %vm380_vm1, %v439_v48, 0.0 }
 0x22d   : > { %v896_v0 = vpop.xlane.xlu1 %895  ;;  %vm992_vm9 = vcmp.eq.f32.partialorder %v1617_v7, %v1736_v56 }
 0x22e   : > { %1241 = vrcp.f32 %v896_v0 }
 0x22f   : > { %448 = vadd.xlane.f32.xlu0 %v447_v3  ;;  %1243 = vrcp.f32 %v1715_v21 }
 0x230   : > { %v1742_v31 = vpop.xlane.xlu0 %1005  ;;  %1245 = vlog2.f32 %v410_v44  ;;  %v729_v44 = vand.u32 65535, %v1653_v25  ;;  %v425_v25 = vsub.f32 0.0, %v1752_v19 }
 0x231   : > { %1247 = vlog2.f32 %v893_v15  ;;  %vm1007_vm10 = vcmp.eq.f32.partialorder %v1636_v17, %v1742_v31 }
 0x233   : > { %722 = vmin.xlane.f32.xlu1 %v721_v6 }
 0x234   : > { %v651_v33 = vpop.xlane.xlu2 %650  ;;  %v1242_v60 = vpop.eup %1241 }
 0x235   : > { %1249 = vlog2.f32 %v651_v33  ;;  %v1746_v49 = vpop.xlane.xlu1 %748  ;;  %v920_v51 = vmul.f32 %v1242_v60, %v1610_v63  ;;  %v1244_v42 = vpop.eup %1243  ;;  %v927_v63 = vsel %vm380_vm1, %v923_v38, 0.0 }
 0x236   : > { %1251 = vrcp.f32 %v651_v33  ;;  %v1246_v15 = vpop.eup %1245  ;;  %v436_v5 = vmul.f32 %v1244_v42, %v1561_v26  ;;  %vm750_vm7 = vcmp.eq.f32.partialorder %v1650_v22, %v1746_v49 }
 0x237   : > { %1253 = vlog2.f32 %v413_v34  ;;  %v924_v20 = vmul.f32 %v920_v51, %v1564_v27  ;;  %v1248_v50 = vpop.eup %1247  ;;  %v731_v27 = vcvt.s32.f32 %v729_v44  ;;  %v1760_v41 = vmul.f32 0.6931472, %v1246_v15 }
 0x238   : > { %1255 = vlog2.f32 %v896_v0  ;;  %v654_v10 = vpop.xlane.xlu0 %653  ;;  %v1767_v0 = vmul.f32 0.6931472, %v1248_v50  ;;  %v440_v57 = vmul.f32 %v436_v5, %v1544_v13 }
 0x239   : > { %1257 = vlog2.f32 %v654_v10  ;;  %v930_v30 = vsel %vm380_vm1, %v924_v20, 0.0 }
 0x23a   : > { %1259 = vrcp.f32 %v654_v10  ;;  %931 = vadd.xlane.f32.xlu2 %v930_v30  ;;  %v450_v10 = vsel %vm380_vm1, %v440_v57, 0.0 }
 0x23b   : > { %v1250_v11 = vpop.eup %1249  ;;  %928 = vadd.xlane.f32.xlu1 %v927_v63 }
 0x23c   : > { %v1252_v34 = vpop.eup %1251  ;;  %v1757_v59 = vpop.xlane.xlu2 %733  ;;  %v1762_v47 = vmul.f32 0.6931472, %v1250_v11 }
 0x23d   : > { %v1254_v48 = vpop.eup %1253  ;;  %v657_v2 = vpop.xlane.xlu1 %656  ;;  %vm735_vm6 = vcmp.eq.f32.partialorder %v1670_v55, %v1757_v59  ;;  %v677_v26 = vmul.f32 %v1252_v34, %v1638_v18  ;;  %v426_v55 = vsub.f32 0.0, %v1760_v41 }
 0x23e   : > { %v1256_v3 = vpop.eup %1255  ;;  %1261 = vlog2.f32 %v657_v2  ;;  %v736_v8 = vsel %vm735_vm6, %v731_v27, inf  ;;  %v1771_v6 = vsub.f32 %v425_v25, %v1762_v47  ;;  %v1781_v42 = vmul.f32 0.6931472, %v1254_v48 }
 0x23f   : > { %v1258_v24 = vpop.eup %1257  ;;  %737 = vmin.xlane.f32.xlu0 %v736_v8  ;;  %v681_v35 = vmul.f32 %v677_v26, %v1588_v45  ;;  %v1784_v20 = vmul.f32 0.6931472, %v1256_v3  ;;  %1263 = vlog2.f32 %v1715_v21  ;;  %v759_v3 = vand.u32 65535, %v1678_v61 }
 0x240   : > { %v1260_v33 = vpop.eup %1259  ;;  %v902_v60 = vpop.xlane.xlu0 %901  ;;  %v911_v18 = vsub.f32 %v1771_v6, %v1767_v0  ;;  %v1777_v51 = vmul.f32 0.6931472, %v1258_v24  ;;  %1265 = vrcp.f32 %v657_v2  ;;  %v427_v63 = vsub.f32 0.0, %v1781_v42 }
 0x241   : > { %v685_v38 = vsel %vm380_vm1, %v681_v35, 0.0  ;;  %v678_v13 = vmul.f32 %v1260_v33, %v1655_v36  ;;  %v744_v36 = vand.u32 65535, %v1630_v16 }
 0x242   : > { %v1787_v45 = vsub.f32 %v426_v55, %v1777_v51  ;;  %686 = vadd.xlane.f32.xlu2 %v685_v38 }
 0x243   : > { %451 = vadd.xlane.f32.xlu1 %v450_v10  ;;  %v682_v44 = vmul.f32 %v678_v13, %v1604_v29  ;;  %v746_v11 = vcvt.s32.f32 %v744_v36  ;;  %v761_v13 = vcvt.s32.f32 %v759_v3 }
 0x244   : > { %v1262_v15 = vpop.eup %1261  ;;  %v899_v50 = vpop.xlane.xlu2 %898  ;;  %v912_v30 = vsub.f32 %v1787_v45, %v1784_v20 }
 0x245   : > { %1267 = vlog2.f32 %v899_v50  ;;  %v1795_v5 = vmul.f32 0.6931472, %v1262_v15  ;;  %v688_v21 = vsel %vm380_vm1, %v682_v44, 0.0  ;;  %v1264_v34 = vpop.eup %1263  ;;  %v751_v25 = vsel %vm750_vm7, %v746_v11, inf  ;;  %v1803_v26 = vpop.xlane.xlu1 %763 }
 0x246   : > { %1269 = vrcp.f32 %v899_v50  ;;  %v1266_v27 = vpop.eup %1265  ;;  %v1806_v8 = vmul.f32 0.6931472, %v1264_v34  ;;  %vm765_vm8 = vcmp.eq.f32.partialorder %v1687_v4, %v1803_v26  ;;  %v770_v6 = vcvt.f32.s32 %v1803_v26 }
 0x247   : > { %1271 = vlog2.f32 %v902_v60  ;;  %689 = vadd.xlane.f32.xlu0 %v688_v21  ;;  %v1801_v29 = vsub.f32 %v427_v63, %v1795_v5  ;;  %v679_v15 = vmul.f32 %v1266_v27, %v1666_v43  ;;  %v766_v50 = vsel %vm765_vm8, %v761_v13, inf }
 0x248   : > { %1273 = vrcp.f32 %v902_v60  ;;  %v660_v16 = vpop.xlane.xlu0 %659  ;;  %v428_v61 = vsub.f32 0.0, %v1806_v8  ;;  %v1001_v27 = vand.u32 65535, %v1623_v12  ;;  %v483_v12 = vcvt.f32.s32 %v1695_v23 }
 0x249   : > { %1275 = vlog2.f32 %v660_v16 }
 0x24a   : > { %1277 = vrcp.f32 %v660_v16 }
 0x24b   : > { %v1268_v48 = vpop.eup %1267  ;;  %752 = vmin.xlane.f32.xlu1 %v751_v25 }
 0x24c   : > { %v1270_v2 = vpop.eup %1269  ;;  %v1808_v22 = vmul.f32 0.6931472, %v1268_v48 }
 0x24d   : > { %v1272_v57 = vpop.eup %1271  ;;  %v921_v24 = vmul.f32 %v1270_v2, %v1683_v1 }
 0x24e   : > { %v1274_v35 = vpop.eup %1273  ;;  %v913_v33 = vsub.f32 %v1801_v29, %v1808_v22  ;;  %v1826_v4 = vmul.f32 0.6931472, %v1272_v57 }
 0x24f   : > { %v1276_v60 = vpop.eup %1275  ;;  %v925_v55 = vmul.f32 %v921_v24, %v1645_v28  ;;  %v922_v36 = vmul.f32 %v1274_v35, %v1672_v58  ;;  %v986_v58 = vand.u32 65535, %v1598_v53  ;;  %v725_v35 = vcvt.f32.s32 %v1724_v52 }
 0x250   : > { %v1278_v38 = vpop.eup %1277  ;;  %v1817_v10 = vmul.f32 0.6931472, %v1276_v60  ;;  %v967_v60 = vcvt.f32.s32 %v1711_v62 }
 0x251   : > { %v933_v44 = vsel %vm380_vm1, %v925_v55, 0.0  ;;  %v680_v1 = vmul.f32 %v1278_v38, %v1689_v14  ;;  %v683_v14 = vmul.f32 %v679_v15, %v1620_v9  ;;  %v926_v43 = vmul.f32 %v922_v36, %v1634_v40 }
 0x252   : > { %934 = vadd.xlane.f32.xlu2 %v933_v44  ;;  %v1824_v28 = vsub.f32 %v428_v61, %v1817_v10  ;;  %v1003_v9 = vcvt.s32.f32 %v1001_v27  ;;  %v484_v61 = vshll.u32 %v483_v12, 16  ;;  %v726_v44 = vshll.u32 %v725_v35, 16 }
 0x253   : > { %767 = vmin.xlane.f32.xlu1 %v766_v50  ;;  %v684_v63 = vmul.f32 %v680_v1, %v1660_v32  ;;  %v691_v11 = vsel %vm380_vm1, %v683_v14, 0.0  ;;  %v936_v34 = vsel %vm380_vm1, %v926_v43, 0.0  ;;  %v988_v32 = vcvt.s32.f32 %v986_v58 }
 0x254   : > { %v914_v21 = vsub.f32 %v1824_v28, %v1826_v4  ;;  %v1008_v40 = vsel %vm1007_vm10, %v1003_v9, inf  ;;  %v968_v15 = vshll.u32 %v967_v60, 16  ;;  %v498_v43 = vcvt.f32.s32 %v1700_v37 }
 0x255   : > { %v694_v16 = vsel %vm380_vm1, %v684_v63, 0.0  ;;  %v993_v25 = vsel %vm992_vm9, %v988_v32, inf  ;;  %vm1015_vm1 = vcmask 7168   ;;  %v740_v58 = vcvt.f32.s32 %v1757_v59 }
 0x256   : > { %695 = vadd.xlane.f32.xlu0 %v694_v16 }
 0x257   : > { %v741_v9 = vshll.u32 %v740_v58, 16  ;;  %v771_v58 = vshll.u32 %v770_v6, 16 }
 0x25a   : > { %692 = vadd.xlane.f32.xlu2 %v691_v11  ;;  %v982_v11 = vcvt.f32.s32 %v1721_v39 }
 0x25b   : > { %937 = vadd.xlane.f32.xlu1 %v936_v34 }
 0x25e   : > { %994 = vmin.xlane.f32.xlu0 %v993_v25  ;;  %v499_v25 = vshll.u32 %v498_v43, 16 }
 0x262   : > { %1009 = vmin.xlane.f32.xlu2 %v1008_v40 }
 0x27a   : > { %v481_v3 = vpop.xlane.xlu0 %480 }
 0x27b   : > { %v482_v17 = vcvt.f32.s32 %v481_v3  ;;  %v983_v3 = vshll.u32 %v982_v11, 16 }
 0x27d   : > { %v485_v50 = vadd.s32 %v484_v61, %v482_v17 }
 0x282   : > { %v496_v53 = vpop.xlane.xlu2 %495 }
 0x283   : > { %v497_v34 = vcvt.f32.s32 %v496_v53 }
 0x286   : > { %v1842_v2 = vpop.xlane.xlu1 %510 }
 0x28c   : > { %v443_v48 = vpop.xlane.xlu2 %442 }
 0x28d   : > { %v453_v37 = vsub.f32 %v1752_v19, %v443_v48  ;;  %v755_v19 = vcvt.f32.s32 %v1746_v49 }
 0x294   : > { %v965_v57 = vpop.xlane.xlu2 %964 }
 0x295   : > { %v966_v55 = vcvt.f32.s32 %v965_v57  ;;  %v500_v57 = vadd.s32 %v499_v25, %v497_v34  ;;  %v997_v25 = vcvt.f32.s32 %v1736_v56  ;;  %v1012_v56 = vcvt.f32.s32 %v1742_v31 }
 0x297   : > { %v969_v23 = vadd.s32 %v968_v15, %v966_v55 }
 0x29a   : > { %v980_v7 = vpop.xlane.xlu0 %979 }
 0x29b   : > { %v981_v32 = vcvt.f32.s32 %v980_v7 }
 0x29c   : > { %v446_v38 = vpop.xlane.xlu2 %445 }
 0x29d   : > { %v984_v35 = vadd.s32 %v983_v3, %v981_v32 }
 0x29e   : > { %v1844_v24 = vpop.xlane.xlu1 %525 }
 0x2a2   : > { %v1855_v62 = vpop.xlane.xlu0 %448 }
 0x2a6   : > { %v723_v13 = vpop.xlane.xlu1 %722 }
 0x2a7   : > { %v724_v1 = vcvt.f32.s32 %v723_v13  ;;  %v513_v13 = vcvt.f32.s32 %v1705_v46 }
 0x2a9   : > { %v727_v36 = vadd.s32 %v726_v44, %v724_v1  ;;  %v512_v1 = vcvt.f32.s32 %v1842_v2  ;;  %v514_v49 = vshll.u32 %v513_v13, 16 }
 0x2ab   : > { %v1016_v52 = vsel %vm1015_vm1, %v485_v50, %v727_v36 }
 0x2ac   : > { %v1021_v63 = vsel %vm1020_vm11, %v1016_v52, %v969_v23  ;;  %v756_v23 = vshll.u32 %v755_v19, 16  ;;  %v515_v52 = vadd.s32 %v514_v49, %v512_v1 }
 0x2ad   : > { %1026 = vst.msk [vmem:[%s1853_s23] sm:$0xff] %vm1025_vm12, %v1021_v63  ;;  %v932_v16 = vpop.xlane.xlu2 %931  ;;  %v527_v63 = vcvt.f32.s32 %v1844_v24  ;;  %v455_v24 = vsub.f32 %v1781_v42, %v1855_v62 }
 0x2ae   : > { %v929_v14 = vpop.xlane.xlu1 %928  ;;  %v940_v15 = vsub.f32 %v1784_v20, %v932_v16 }
 0x2af   : > { %v939_v7 = vsub.f32 %v1767_v0, %v929_v14  ;;  %v528_v0 = vcvt.f32.s32 %v1729_v54 }
 0x2b1   : > { %v529_v43 = vshll.u32 %v528_v0, 16 }
 0x2b2   : > { %v738_v27 = vpop.xlane.xlu0 %737 }
 0x2b3   : > { %v739_v40 = vcvt.f32.s32 %v738_v27  ;;  %v530_v34 = vadd.s32 %v529_v43, %v527_v63 }
 0x2b5   : > { %v742_v12 = vadd.s32 %v741_v9, %v739_v40  ;;  %v687_v60 = vpop.xlane.xlu2 %686 }
 0x2b6   : > { %v452_v17 = vpop.xlane.xlu1 %451  ;;  %v697_v39 = vsub.f32 %v1762_v47, %v687_v60  ;;  %v454_v47 = vsub.f32 %v1760_v41, %v446_v38 }
 0x2b7   : > { %v1017_v59 = vsel %vm1015_vm1, %v500_v57, %v742_v12 }
 0x2b8   : > { %v1022_v53 = vsel %vm1020_vm11, %v1017_v59, %v984_v35  ;;  %v701_v55 = vadd.f32 %v697_v39, %v453_v37  ;;  %v998_v35 = vshll.u32 %v997_v25, 16  ;;  %v1013_v59 = vshll.u32 %v1012_v56, 16 }
 0x2b9   : > { %1027 = vst.msk [vmem:[%s1853_s23 + $0x8] sm:$0xff] %vm1025_vm12, %v1022_v53 }
 0x2ba   : > { %v690_v61 = vpop.xlane.xlu0 %689  ;;  %v943_v48 = vadd.f32 %v939_v7, %v701_v55 }
 0x2bb   : > { %v698_v44 = vsub.f32 %v1777_v51, %v690_v61 }
 0x2bc   : > { %v1030_v46 = vsel %vm1015_vm1, %v911_v18, %v943_v48 }
 0x2bd   : > { %v702_v50 = vadd.f32 %v698_v44, %v454_v47  ;;  %1034 = vst.msk [vmem:[%s1876_s26] sm:$0xff] %vm1020_vm11, %v1030_v46 }
 0x2be   : > { %v753_v36 = vpop.xlane.xlu1 %752 }
 0x2bf   : > { %v944_v41 = vadd.f32 %v940_v15, %v702_v50  ;;  %v754_v38 = vcvt.f32.s32 %v753_v36 }
 0x2c1   : > { %v1031_v51 = vsel %vm1015_vm1, %v912_v30, %v944_v41  ;;  %v757_v2 = vadd.s32 %v756_v23, %v754_v38  ;;  %v456_v30 = vsub.f32 %v1806_v8, %v452_v17 }
 0x2c2   : > { %1035 = vst.msk [vmem:[%s1876_s26 + $0x8] sm:$0xff] %vm1020_vm11, %v1031_v51 }
 0x2c3   : > { %v1018_v18 = vsel %vm1015_vm1, %v515_v52, %v757_v2 }
 0x2c5   : > { %v935_v16 = vpop.xlane.xlu2 %934 }
 0x2c6   : > { %v768_v14 = vpop.xlane.xlu1 %767  ;;  %v941_v8 = vsub.f32 %v1808_v22, %v935_v16 }
 0x2c7   : > { %v769_v11 = vcvt.f32.s32 %v768_v14 }
 0x2c9   : > { %v772_v20 = vadd.s32 %v771_v58, %v769_v11  ;;  %v696_v45 = vpop.xlane.xlu0 %695 }
 0x2ca   : > { %v700_v32 = vsub.f32 %v1817_v10, %v696_v45 }
 0x2cb   : > { %v1019_v54 = vsel %vm1015_vm1, %v530_v34, %v772_v20 }
 0x2cc   : > { %v704_v27 = vadd.f32 %v700_v32, %v456_v30 }
 0x2cd   : > { %v693_v26 = vpop.xlane.xlu2 %692 }
 0x2ce   : > { %v699_v9 = vsub.f32 %v1795_v5, %v693_v26  ;;  %v938_v40 = vpop.xlane.xlu1 %937 }
 0x2cf   : > { %v942_v3 = vsub.f32 %v1826_v4, %v938_v40 }
 0x2d0   : > { %v703_v57 = vadd.f32 %v699_v9, %v455_v24 }
 0x2d1   : > { %v946_v10 = vadd.f32 %v942_v3, %v704_v27  ;;  %v995_v12 = vpop.xlane.xlu0 %994 }
 0x2d2   : > { %v945_v60 = vadd.f32 %v941_v8, %v703_v57  ;;  %v996_v17 = vcvt.f32.s32 %v995_v12 }
 0x2d3   : > { %v1033_v42 = vsel %vm1015_vm1, %v914_v21, %v946_v10 }
 0x2d4   : > { %v1032_v5 = vsel %vm1015_vm1, %v913_v33, %v945_v60  ;;  %v999_v62 = vadd.s32 %v998_v35, %v996_v17  ;;  %1037 = vst.msk [vmem:[%s1876_s26 + $0x18] sm:$0xff] %vm1020_vm11, %v1033_v42 }
 0x2d5   : > { %1036 = vst.msk [vmem:[%s1876_s26 + $0x10] sm:$0xff] %vm1020_vm11, %v1032_v5  ;;  %v1010_v37 = vpop.xlane.xlu2 %1009 }
 0x2d6   : > { %v1023_v31 = vsel %vm1020_vm11, %v1018_v18, %v999_v62  ;;  %v1011_v39 = vcvt.f32.s32 %v1010_v37 }
 0x2d7   : > { %1028 = vst.msk [vmem:[%s1853_s23 + $0x10] sm:$0xff] %vm1025_vm12, %v1023_v31 }
 0x2d8   : > { %v1014_v28 = vadd.s32 %v1013_v59, %v1011_v39 }
 0x2da   : > { %v1024_v4 = vsel %vm1020_vm11, %v1019_v54, %v1014_v28 }
 0x2db   : > { %1029 = vst.msk [vmem:[%s1853_s23 + $0x18] sm:$0xff] %vm1025_vm12, %v1024_v4 }
 0x2dc PF: > { %s17_s21 = sadd.s32 1, %s1285_s21  }
 0x2dd   : > { %p14_p4 = scmp.ge.s32.totalorder %s17_s21, 4  }
 0x2df   :  { %16 = sbr.rel (!%p14_p4) target bundleno = 1 (0x1), region = 90 }

</bundles_post_ra>
